<compile_context>
chip_gen: v5e
topology: v5e:2x2
jax: 0.10.0
libtpu: 0.0.40
codegen_flags: <defaults>
</compile_context>

<pallas_src>
import functools
import math

import jax
import jax.numpy as jnp
from jax.experimental import pallas as pl
from jax.experimental.pallas import tpu as pltpu


def _ffparser_kernel(x_ref, m_ref, ch_ref, sh_ref, cwf_ref, nswf_ref,
                     cwi_ref, swi_ref, o_ref, ir_scr, ii_scr,
                     *, channel_block, height):
    """One (batch, channel-block) tile of FFParser.

    x_ref / m_ref / o_ref : (cb*H, W)  input, attentive map, output (channel rows stacked)
    ch_ref, sh_ref        : (H, H)  cos / sin DFT matrices along H (symmetric)
    cwf_ref, nswf_ref     : (W, W)  cos / -sin DFT matrices along W (forward)
    cwi_ref, swi_ref      : (W, W)  cos / sin DFT matrices along W, pre-scaled by 1/(H*W)
    ir_scr, ii_scr        : (cb*H, W) VMEM scratch (real / imag after inverse-H DFT)
    """
    f32 = jnp.float32
    dot = functools.partial(jnp.dot, preferred_element_type=f32)

    CH = ch_ref[...]
    SH = sh_ref[...]
    CWf = cwf_ref[...]
    nSWf = nswf_ref[...]
    CWi = cwi_ref[...]
    SWi = swi_ref[...]

    X = x_ref[...]            # (cb*H, W)
    M = m_ref[...]            # (cb*H, W) real attentive map

    # ---- forward DFT along W for the whole channel block (big matmuls, M = cb*H) ----
    WR = dot(X, CWf)          # Re[x @ F_W]
    WI = dot(X, nSWf)         # Im[x @ F_W]   (sign folded into -SW)

    H = height
    for c in range(channel_block):      # short static unroll; channels independent
        s = slice(c * H, (c + 1) * H)
        wr, wi, m = WR[s], WI[s], M[s]

        # ---- forward DFT along H:  (CH - i SH) @ (wr + i wi) ----
        hr = dot(CH, wr) + dot(SH, wi)
        hi = dot(CH, wi) - dot(SH, wr)

        # ---- modulate with the (real) attentive map ----
        pr = m * hr
        pi = m * hi

        # ---- inverse DFT along H:  (CH + i SH) @ (pr + i pi) ----
        ir_scr[pl.ds(c * H, H), :] = dot(CH, pr) - dot(SH, pi)
        ii_scr[pl.ds(c * H, H), :] = dot(CH, pi) + dot(SH, pr)

    # ---- inverse DFT along W, real part, whole block; 1/(H*W) folded into CWi/SWi ----
    y = dot(ir_scr[...], CWi) - dot(ii_scr[...], SWi)
    o_ref[...] = y.astype(o_ref.dtype)


def _dft_mats(n):
    """Symmetric cos/sin DFT matrices of size (n, n) in f32."""
    k = jnp.arange(n, dtype=jnp.int32)
    # reduce phase index mod n before converting to float -> better f32 accuracy
    prod = jnp.mod(k[:, None] * k[None, :], n).astype(jnp.float32)
    ang = (2.0 * math.pi / n) * prod
    return jnp.cos(ang), jnp.sin(ang)


def _pick_channel_block(C, H, W, *, max_cb=8, max_tile_bytes=1 << 20):
    """Largest divisor of C with a <=max_tile_bytes tile that keeps (cb*H) sublane-tileable."""
    fit = max(1, min(max_cb, max_tile_bytes // max(1, H * W * 4)))
    best = 0
    for d in range(1, C + 1):
        if C % d != 0 or d > fit:
            continue
        if (d * H) % 8 == 0 or d == C:   # (8,128) rule: divisible by 8 OR full extent
            best = d
    if best == 0:
        best = C                          # full extent always satisfies the block rule
    return best


def ffparser_forward(x, attentive_map, *, channel_block=None):
    """FFParser forward:  Re[ ifft2( fft2(x) * attentive_map ) ].

    x: (N, C, H, W) float32.  attentive_map: (1, C, H, W) float32 (real parameter).
    Returns (N, C, H, W) float32.
    """
    N, C, H, W = x.shape
    assert attentive_map.shape == (1, C, H, W)

    x = x.astype(jnp.float32)
    amap = attentive_map.astype(jnp.float32)

    CH, SH = _dft_mats(H)
    CW, SW = _dft_mats(W)
    inv = jnp.float32(1.0 / float(H * W))
    CWf = CW                         # forward cos along W
    nSWf = -SW                       # forward -sin along W (sign folded host-side)
    CWi = CW * inv                   # inverse cos along W with 1/(H*W) folded in
    SWi = SW * inv                   # inverse sin along W with 1/(H*W) folded in

    if channel_block is None:
        channel_block = _pick_channel_block(C, H, W)
    cb = channel_block
    assert C % cb == 0, "channel_block must divide C"
    assert (cb * H) % 8 == 0 or cb == C, "channel block violates sublane tiling rule"

    rows = cb * H
    grid = (N, C // cb)

    # Free metadata reshapes (row-major NCHW: merging C and H is stride-preserving).
    x3 = x.reshape(N, C * H, W)
    m3 = amap.reshape(1, C * H, W)

    kernel = functools.partial(_ffparser_kernel, channel_block=cb, height=H)

    # Advisory cost for the XLA scheduler.
    flops = float(N * C) * (8.0 * H * W * W + 16.0 * H * H * W)
    bytes_accessed = 4 * (3 * N * C * H * W + 2 * H * H + 4 * W * W)

    # Explicit VMEM headroom: x/m/out tiles double-buffered + 2 scratch slabs + matrices.
    tile = rows * W * 4
    mats = (2 * H * H + 4 * W * W) * 4
    est = 12 * tile + 2 * mats + (2 << 20)
    vmem_limit = int(min(max(est, 16 * 2**20), 48 * 2**20))

    out3 = pl.pallas_call(
        kernel,
        out_shape=jax.ShapeDtypeStruct((N, C * H, W), jnp.float32),
        grid_spec=pltpu.PrefetchScalarGridSpec(
            num_scalar_prefetch=0,
            grid=grid,
            in_specs=[
                pl.BlockSpec((None, rows, W), lambda n, c: (n, c, 0)),   # x
                pl.BlockSpec((None, rows, W), lambda n, c: (0, c, 0)),   # attentive map
                pl.BlockSpec((H, H), lambda n, c: (0, 0)),               # CH
                pl.BlockSpec((H, H), lambda n, c: (0, 0)),               # SH
                pl.BlockSpec((W, W), lambda n, c: (0, 0)),               # CW  (fwd)
                pl.BlockSpec((W, W), lambda n, c: (0, 0)),               # -SW (fwd)
                pl.BlockSpec((W, W), lambda n, c: (0, 0)),               # CW/(H*W) (inv)
                pl.BlockSpec((W, W), lambda n, c: (0, 0)),               # SW/(H*W) (inv)
            ],
            out_specs=pl.BlockSpec((None, rows, W), lambda n, c: (n, c, 0)),
            scratch_shapes=[
                pltpu.VMEM((rows, W), jnp.float32),   # real part after inverse-H DFT
                pltpu.VMEM((rows, W), jnp.float32),   # imag part after inverse-H DFT
            ],
        ),
        compiler_params=pltpu.CompilerParams(
            dimension_semantics=("parallel", "parallel"),   # independent -> megacore
            vmem_limit_bytes=vmem_limit,
        ),
        cost_estimate=pl.CostEstimate(
            flops=int(flops), transcendentals=0, bytes_accessed=int(bytes_accessed)),
    )(x3, m3, CH, SH, CWf, nSWf, CWi, SWi)

    return out3.reshape(N, C, H, W)


# ------------------------- pure-JAX reference --------------------------------
def ffparser_reference(x, attentive_map):
    return jnp.fft.ifft2(jnp.fft.fft2(x) * attentive_map).real.astype(jnp.float32)


if __name__ == "__main__":
    key = jax.random.PRNGKey(0)
    k_x, k_m = jax.random.split(key, 2)

    N, C, H, W = 2, 4, 16, 16
    x = jax.random.normal(k_x, (N, C, H, W), jnp.float32)
    # nn.Parameter(torch.randn(1, channels, height, width))
    amap = jax.random.normal(k_m, (1, C, H, W), jnp.float32)

    out = jax.block_until_ready(ffparser_forward(x, amap))
    ref = ffparser_reference(x, amap)

    assert out.shape == (N, C, H, W)
    assert out.dtype == jnp.float32
    max_err = float(jnp.max(jnp.abs(out - ref)))
    assert max_err < 1e-3, f"mismatch, max_err={max_err}"

    print("KERNEL_OK")
</pallas_src>

<mosaic_0001>
module attributes {stable_mosaic.version = 11 : i64} {
  func.func @_ffparser_kernel(%arg0: i32, %arg1: i32, %arg2: memref<1x64x16xf32, #tpu.memory_space<vmem>>, %arg3: memref<1x64x16xf32, #tpu.memory_space<vmem>>, %arg4: memref<16x16xf32, #tpu.memory_space<vmem>>, %arg5: memref<16x16xf32, #tpu.memory_space<vmem>>, %arg6: memref<16x16xf32, #tpu.memory_space<vmem>>, %arg7: memref<16x16xf32, #tpu.memory_space<vmem>>, %arg8: memref<16x16xf32, #tpu.memory_space<vmem>>, %arg9: memref<16x16xf32, #tpu.memory_space<vmem>>, %arg10: memref<1x64x16xf32, #tpu.memory_space<vmem>>, %arg11: memref<64x16xf32, #tpu.memory_space<vmem>>, %arg12: memref<64x16xf32, #tpu.memory_space<vmem>>) attributes {dimension_semantics = [#tpu.dimension_semantics<parallel>, #tpu.dimension_semantics<parallel>], iteration_bounds = array<i64: 2, 1>, scalar_prefetch = 0 : i64, scratch_operands = 2 : i64, tpu.core_type = #tpu.core_type<tc>, window_params = [{transform_indices = @transform_0, window_bounds = array<i64: 1, 64, 16>}, {transform_indices = @transform_1, window_bounds = array<i64: 1, 64, 16>}, {pipeline_mode = #tpu.pipeline_mode<synchronous>, transform_indices = @transform_2, window_bounds = array<i64: 16, 16>}, {pipeline_mode = #tpu.pipeline_mode<synchronous>, transform_indices = @transform_3, window_bounds = array<i64: 16, 16>}, {pipeline_mode = #tpu.pipeline_mode<synchronous>, transform_indices = @transform_4, window_bounds = array<i64: 16, 16>}, {pipeline_mode = #tpu.pipeline_mode<synchronous>, transform_indices = @transform_5, window_bounds = array<i64: 16, 16>}, {pipeline_mode = #tpu.pipeline_mode<synchronous>, transform_indices = @transform_6, window_bounds = array<i64: 16, 16>}, {pipeline_mode = #tpu.pipeline_mode<synchronous>, transform_indices = @transform_7, window_bounds = array<i64: 16, 16>}, {transform_indices = @transform_8, window_bounds = array<i64: 1, 64, 16>}]} {
    %c0 = arith.constant 0 : index
    %c0_0 = arith.constant 0 : index
    %0 = vector.load %arg4[%c0, %c0_0] : memref<16x16xf32, #tpu.memory_space<vmem>>, vector<16x16xf32>
    %c0_1 = arith.constant 0 : index
    %c0_2 = arith.constant 0 : index
    %1 = vector.load %arg5[%c0_1, %c0_2] : memref<16x16xf32, #tpu.memory_space<vmem>>, vector<16x16xf32>
    %c0_3 = arith.constant 0 : index
    %c0_4 = arith.constant 0 : index
    %2 = vector.load %arg6[%c0_3, %c0_4] : memref<16x16xf32, #tpu.memory_space<vmem>>, vector<16x16xf32>
    %c0_5 = arith.constant 0 : index
    %c0_6 = arith.constant 0 : index
    %3 = vector.load %arg7[%c0_5, %c0_6] : memref<16x16xf32, #tpu.memory_space<vmem>>, vector<16x16xf32>
    %c0_7 = arith.constant 0 : index
    %c0_8 = arith.constant 0 : index
    %4 = vector.load %arg8[%c0_7, %c0_8] : memref<16x16xf32, #tpu.memory_space<vmem>>, vector<16x16xf32>
    %c0_9 = arith.constant 0 : index
    %c0_10 = arith.constant 0 : index
    %5 = vector.load %arg9[%c0_9, %c0_10] : memref<16x16xf32, #tpu.memory_space<vmem>>, vector<16x16xf32>
    %c0_11 = arith.constant 0 : index
    %c0_12 = arith.constant 0 : index
    %c0_13 = arith.constant 0 : index
    %6 = vector.load %arg2[%c0_11, %c0_12, %c0_13] : memref<1x64x16xf32, #tpu.memory_space<vmem>>, vector<1x64x16xf32>
    %7 = vector.shape_cast %6 : vector<1x64x16xf32> to vector<64x16xf32>
    %c0_14 = arith.constant 0 : index
    %c0_15 = arith.constant 0 : index
    %c0_16 = arith.constant 0 : index
    %8 = vector.load %arg3[%c0_14, %c0_15, %c0_16] : memref<1x64x16xf32, #tpu.memory_space<vmem>>, vector<1x64x16xf32>
    %9 = vector.shape_cast %8 : vector<1x64x16xf32> to vector<64x16xf32>
    %cst = arith.constant dense<0.000000e+00> : vector<64x16xf32>
    %10 = tpu.matmul %7, %2, %cst {dimension_numbers = #tpu.dot_dimension_numbers<[1], [0], [0], [1], [0, 0, 1, 1], [], []>} : vector<64x16xf32>, vector<16x16xf32>, vector<64x16xf32> -> vector<64x16xf32>
    %cst_17 = arith.constant dense<0.000000e+00> : vector<64x16xf32>
    %11 = tpu.matmul %7, %3, %cst_17 {dimension_numbers = #tpu.dot_dimension_numbers<[1], [0], [0], [1], [0, 0, 1, 1], [], []>} : vector<64x16xf32>, vector<16x16xf32>, vector<64x16xf32> -> vector<64x16xf32>
    %12 = vector.extract_strided_slice %10 {offsets = [0, 0], sizes = [16, 16], strides = [1, 1]} : vector<64x16xf32> to vector<16x16xf32>
    %13 = vector.extract_strided_slice %11 {offsets = [0, 0], sizes = [16, 16], strides = [1, 1]} : vector<64x16xf32> to vector<16x16xf32>
    %14 = vector.extract_strided_slice %9 {offsets = [0, 0], sizes = [16, 16], strides = [1, 1]} : vector<64x16xf32> to vector<16x16xf32>
    %cst_18 = arith.constant dense<0.000000e+00> : vector<16x16xf32>
    %15 = tpu.matmul %0, %12, %cst_18 {dimension_numbers = #tpu.dot_dimension_numbers<[1], [0], [0], [1], [0, 0, 1, 1], [], []>} : vector<16x16xf32>, vector<16x16xf32>, vector<16x16xf32> -> vector<16x16xf32>
    %cst_19 = arith.constant dense<0.000000e+00> : vector<16x16xf32>
    %16 = tpu.matmul %1, %13, %cst_19 {dimension_numbers = #tpu.dot_dimension_numbers<[1], [0], [0], [1], [0, 0, 1, 1], [], []>} : vector<16x16xf32>, vector<16x16xf32>, vector<16x16xf32> -> vector<16x16xf32>
    %17 = arith.addf %15, %16 : vector<16x16xf32>
    %cst_20 = arith.constant dense<0.000000e+00> : vector<16x16xf32>
    %18 = tpu.matmul %0, %13, %cst_20 {dimension_numbers = #tpu.dot_dimension_numbers<[1], [0], [0], [1], [0, 0, 1, 1], [], []>} : vector<16x16xf32>, vector<16x16xf32>, vector<16x16xf32> -> vector<16x16xf32>
    %cst_21 = arith.constant dense<0.000000e+00> : vector<16x16xf32>
    %19 = tpu.matmul %1, %12, %cst_21 {dimension_numbers = #tpu.dot_dimension_numbers<[1], [0], [0], [1], [0, 0, 1, 1], [], []>} : vector<16x16xf32>, vector<16x16xf32>, vector<16x16xf32> -> vector<16x16xf32>
    %20 = arith.subf %18, %19 : vector<16x16xf32>
    %21 = arith.mulf %14, %17 : vector<16x16xf32>
    %22 = arith.mulf %14, %20 : vector<16x16xf32>
    %cst_22 = arith.constant dense<0.000000e+00> : vector<16x16xf32>
    %23 = tpu.matmul %0, %21, %cst_22 {dimension_numbers = #tpu.dot_dimension_numbers<[1], [0], [0], [1], [0, 0, 1, 1], [], []>} : vector<16x16xf32>, vector<16x16xf32>, vector<16x16xf32> -> vector<16x16xf32>
    %cst_23 = arith.constant dense<0.000000e+00> : vector<16x16xf32>
    %24 = tpu.matmul %1, %22, %cst_23 {dimension_numbers = #tpu.dot_dimension_numbers<[1], [0], [0], [1], [0, 0, 1, 1], [], []>} : vector<16x16xf32>, vector<16x16xf32>, vector<16x16xf32> -> vector<16x16xf32>
    %25 = arith.subf %23, %24 : vector<16x16xf32>
    %c0_24 = arith.constant 0 : index
    %c0_25 = arith.constant 0 : index
    %26 = vector.load %arg11[%c0_24, %c0_25] : memref<64x16xf32, #tpu.memory_space<vmem>>, vector<16x16xf32>
    tpu.vector_store %arg11[%c0_24, %c0_25], %25 {strides = array<i32>} : memref<64x16xf32, #tpu.memory_space<vmem>>, vector<16x16xf32>,
    %cst_26 = arith.constant dense<0.000000e+00> : vector<16x16xf32>
    %27 = tpu.matmul %0, %22, %cst_26 {dimension_numbers = #tpu.dot_dimension_numbers<[1], [0], [0], [1], [0, 0, 1, 1], [], []>} : vector<16x16xf32>, vector<16x16xf32>, vector<16x16xf32> -> vector<16x16xf32>
    %cst_27 = arith.constant dense<0.000000e+00> : vector<16x16xf32>
    %28 = tpu.matmul %1, %21, %cst_27 {dimension_numbers = #tpu.dot_dimension_numbers<[1], [0], [0], [1], [0, 0, 1, 1], [], []>} : vector<16x16xf32>, vector<16x16xf32>, vector<16x16xf32> -> vector<16x16xf32>
    %29 = arith.addf %27, %28 : vector<16x16xf32>
    %c0_28 = arith.constant 0 : index
    %c0_29 = arith.constant 0 : index
    %30 = vector.load %arg12[%c0_28, %c0_29] : memref<64x16xf32, #tpu.memory_space<vmem>>, vector<16x16xf32>
    tpu.vector_store %arg12[%c0_28, %c0_29], %29 {strides = array<i32>} : memref<64x16xf32, #tpu.memory_space<vmem>>, vector<16x16xf32>,
    %31 = vector.extract_strided_slice %10 {offsets = [16, 0], sizes = [16, 16], strides = [1, 1]} : vector<64x16xf32> to vector<16x16xf32>
    %32 = vector.extract_strided_slice %11 {offsets = [16, 0], sizes = [16, 16], strides = [1, 1]} : vector<64x16xf32> to vector<16x16xf32>
    %33 = vector.extract_strided_slice %9 {offsets = [16, 0], sizes = [16, 16], strides = [1, 1]} : vector<64x16xf32> to vector<16x16xf32>
    %cst_30 = arith.constant dense<0.000000e+00> : vector<16x16xf32>
    %34 = tpu.matmul %0, %31, %cst_30 {dimension_numbers = #tpu.dot_dimension_numbers<[1], [0], [0], [1], [0, 0, 1, 1], [], []>} : vector<16x16xf32>, vector<16x16xf32>, vector<16x16xf32> -> vector<16x16xf32>
    %cst_31 = arith.constant dense<0.000000e+00> : vector<16x16xf32>
    %35 = tpu.matmul %1, %32, %cst_31 {dimension_numbers = #tpu.dot_dimension_numbers<[1], [0], [0], [1], [0, 0, 1, 1], [], []>} : vector<16x16xf32>, vector<16x16xf32>, vector<16x16xf32> -> vector<16x16xf32>
    %36 = arith.addf %34, %35 : vector<16x16xf32>
    %cst_32 = arith.constant dense<0.000000e+00> : vector<16x16xf32>
    %37 = tpu.matmul %0, %32, %cst_32 {dimension_numbers = #tpu.dot_dimension_numbers<[1], [0], [0], [1], [0, 0, 1, 1], [], []>} : vector<16x16xf32>, vector<16x16xf32>, vector<16x16xf32> -> vector<16x16xf32>
    %cst_33 = arith.constant dense<0.000000e+00> : vector<16x16xf32>
    %38 = tpu.matmul %1, %31, %cst_33 {dimension_numbers = #tpu.dot_dimension_numbers<[1], [0], [0], [1], [0, 0, 1, 1], [], []>} : vector<16x16xf32>, vector<16x16xf32>, vector<16x16xf32> -> vector<16x16xf32>
    %39 = arith.subf %37, %38 : vector<16x16xf32>
    %40 = arith.mulf %33, %36 : vector<16x16xf32>
    %41 = arith.mulf %33, %39 : vector<16x16xf32>
    %cst_34 = arith.constant dense<0.000000e+00> : vector<16x16xf32>
    %42 = tpu.matmul %0, %40, %cst_34 {dimension_numbers = #tpu.dot_dimension_numbers<[1], [0], [0], [1], [0, 0, 1, 1], [], []>} : vector<16x16xf32>, vector<16x16xf32>, vector<16x16xf32> -> vector<16x16xf32>
    %cst_35 = arith.constant dense<0.000000e+00> : vector<16x16xf32>
    %43 = tpu.matmul %1, %41, %cst_35 {dimension_numbers = #tpu.dot_dimension_numbers<[1], [0], [0], [1], [0, 0, 1, 1], [], []>} : vector<16x16xf32>, vector<16x16xf32>, vector<16x16xf32> -> vector<16x16xf32>
    %44 = arith.subf %42, %43 : vector<16x16xf32>
    %c16 = arith.constant 16 : index
    %c0_36 = arith.constant 0 : index
    %45 = vector.load %arg11[%c16, %c0_36] : memref<64x16xf32, #tpu.memory_space<vmem>>, vector<16x16xf32>
    tpu.vector_store %arg11[%c16, %c0_36], %44 {strides = array<i32>} : memref<64x16xf32, #tpu.memory_space<vmem>>, vector<16x16xf32>,
    %cst_37 = arith.constant dense<0.000000e+00> : vector<16x16xf32>
    %46 = tpu.matmul %0, %41, %cst_37 {dimension_numbers = #tpu.dot_dimension_numbers<[1], [0], [0], [1], [0, 0, 1, 1], [], []>} : vector<16x16xf32>, vector<16x16xf32>, vector<16x16xf32> -> vector<16x16xf32>
    %cst_38 = arith.constant dense<0.000000e+00> : vector<16x16xf32>
    %47 = tpu.matmul %1, %40, %cst_38 {dimension_numbers = #tpu.dot_dimension_numbers<[1], [0], [0], [1], [0, 0, 1, 1], [], []>} : vector<16x16xf32>, vector<16x16xf32>, vector<16x16xf32> -> vector<16x16xf32>
    %48 = arith.addf %46, %47 : vector<16x16xf32>
    %c16_39 = arith.constant 16 : index
    %c0_40 = arith.constant 0 : index
    %49 = vector.load %arg12[%c16_39, %c0_40] : memref<64x16xf32, #tpu.memory_space<vmem>>, vector<16x16xf32>
    tpu.vector_store %arg12[%c16_39, %c0_40], %48 {strides = array<i32>} : memref<64x16xf32, #tpu.memory_space<vmem>>, vector<16x16xf32>,
    %50 = vector.extract_strided_slice %10 {offsets = [32, 0], sizes = [16, 16], strides = [1, 1]} : vector<64x16xf32> to vector<16x16xf32>
    %51 = vector.extract_strided_slice %11 {offsets = [32, 0], sizes = [16, 16], strides = [1, 1]} : vector<64x16xf32> to vector<16x16xf32>
    %52 = vector.extract_strided_slice %9 {offsets = [32, 0], sizes = [16, 16], strides = [1, 1]} : vector<64x16xf32> to vector<16x16xf32>
    %cst_41 = arith.constant dense<0.000000e+00> : vector<16x16xf32>
    %53 = tpu.matmul %0, %50, %cst_41 {dimension_numbers = #tpu.dot_dimension_numbers<[1], [0], [0], [1], [0, 0, 1, 1], [], []>} : vector<16x16xf32>, vector<16x16xf32>, vector<16x16xf32> -> vector<16x16xf32>
    %cst_42 = arith.constant dense<0.000000e+00> : vector<16x16xf32>
    %54 = tpu.matmul %1, %51, %cst_42 {dimension_numbers = #tpu.dot_dimension_numbers<[1], [0], [0], [1], [0, 0, 1, 1], [], []>} : vector<16x16xf32>, vector<16x16xf32>, vector<16x16xf32> -> vector<16x16xf32>
    %55 = arith.addf %53, %54 : vector<16x16xf32>
    %cst_43 = arith.constant dense<0.000000e+00> : vector<16x16xf32>
    %56 = tpu.matmul %0, %51, %cst_43 {dimension_numbers = #tpu.dot_dimension_numbers<[1], [0], [0], [1], [0, 0, 1, 1], [], []>} : vector<16x16xf32>, vector<16x16xf32>, vector<16x16xf32> -> vector<16x16xf32>
    %cst_44 = arith.constant dense<0.000000e+00> : vector<16x16xf32>
    %57 = tpu.matmul %1, %50, %cst_44 {dimension_numbers = #tpu.dot_dimension_numbers<[1], [0], [0], [1], [0, 0, 1, 1], [], []>} : vector<16x16xf32>, vector<16x16xf32>, vector<16x16xf32> -> vector<16x16xf32>
    %58 = arith.subf %56, %57 : vector<16x16xf32>
    %59 = arith.mulf %52, %55 : vector<16x16xf32>
    %60 = arith.mulf %52, %58 : vector<16x16xf32>
    %cst_45 = arith.constant dense<0.000000e+00> : vector<16x16xf32>
    %61 = tpu.matmul %0, %59, %cst_45 {dimension_numbers = #tpu.dot_dimension_numbers<[1], [0], [0], [1], [0, 0, 1, 1], [], []>} : vector<16x16xf32>, vector<16x16xf32>, vector<16x16xf32> -> vector<16x16xf32>
    %cst_46 = arith.constant dense<0.000000e+00> : vector<16x16xf32>
    %62 = tpu.matmul %1, %60, %cst_46 {dimension_numbers = #tpu.dot_dimension_numbers<[1], [0], [0], [1], [0, 0, 1, 1], [], []>} : vector<16x16xf32>, vector<16x16xf32>, vector<16x16xf32> -> vector<16x16xf32>
    %63 = arith.subf %61, %62 : vector<16x16xf32>
    %c32 = arith.constant 32 : index
    %c0_47 = arith.constant 0 : index
    %64 = vector.load %arg11[%c32, %c0_47] : memref<64x16xf32, #tpu.memory_space<vmem>>, vector<16x16xf32>
    tpu.vector_store %arg11[%c32, %c0_47], %63 {strides = array<i32>} : memref<64x16xf32, #tpu.memory_space<vmem>>, vector<16x16xf32>,
    %cst_48 = arith.constant dense<0.000000e+00> : vector<16x16xf32>
    %65 = tpu.matmul %0, %60, %cst_48 {dimension_numbers = #tpu.dot_dimension_numbers<[1], [0], [0], [1], [0, 0, 1, 1], [], []>} : vector<16x16xf32>, vector<16x16xf32>, vector<16x16xf32> -> vector<16x16xf32>
    %cst_49 = arith.constant dense<0.000000e+00> : vector<16x16xf32>
    %66 = tpu.matmul %1, %59, %cst_49 {dimension_numbers = #tpu.dot_dimension_numbers<[1], [0], [0], [1], [0, 0, 1, 1], [], []>} : vector<16x16xf32>, vector<16x16xf32>, vector<16x16xf32> -> vector<16x16xf32>
    %67 = arith.addf %65, %66 : vector<16x16xf32>
    %c32_50 = arith.constant 32 : index
    %c0_51 = arith.constant 0 : index
    %68 = vector.load %arg12[%c32_50, %c0_51] : memref<64x16xf32, #tpu.memory_space<vmem>>, vector<16x16xf32>
    tpu.vector_store %arg12[%c32_50, %c0_51], %67 {strides = array<i32>} : memref<64x16xf32, #tpu.memory_space<vmem>>, vector<16x16xf32>,
    %69 = vector.extract_strided_slice %10 {offsets = [48, 0], sizes = [16, 16], strides = [1, 1]} : vector<64x16xf32> to vector<16x16xf32>
    %70 = vector.extract_strided_slice %11 {offsets = [48, 0], sizes = [16, 16], strides = [1, 1]} : vector<64x16xf32> to vector<16x16xf32>
    %71 = vector.extract_strided_slice %9 {offsets = [48, 0], sizes = [16, 16], strides = [1, 1]} : vector<64x16xf32> to vector<16x16xf32>
    %cst_52 = arith.constant dense<0.000000e+00> : vector<16x16xf32>
    %72 = tpu.matmul %0, %69, %cst_52 {dimension_numbers = #tpu.dot_dimension_numbers<[1], [0], [0], [1], [0, 0, 1, 1], [], []>} : vector<16x16xf32>, vector<16x16xf32>, vector<16x16xf32> -> vector<16x16xf32>
    %cst_53 = arith.constant dense<0.000000e+00> : vector<16x16xf32>
    %73 = tpu.matmul %1, %70, %cst_53 {dimension_numbers = #tpu.dot_dimension_numbers<[1], [0], [0], [1], [0, 0, 1, 1], [], []>} : vector<16x16xf32>, vector<16x16xf32>, vector<16x16xf32> -> vector<16x16xf32>
    %74 = arith.addf %72, %73 : vector<16x16xf32>
    %cst_54 = arith.constant dense<0.000000e+00> : vector<16x16xf32>
    %75 = tpu.matmul %0, %70, %cst_54 {dimension_numbers = #tpu.dot_dimension_numbers<[1], [0], [0], [1], [0, 0, 1, 1], [], []>} : vector<16x16xf32>, vector<16x16xf32>, vector<16x16xf32> -> vector<16x16xf32>
    %cst_55 = arith.constant dense<0.000000e+00> : vector<16x16xf32>
    %76 = tpu.matmul %1, %69, %cst_55 {dimension_numbers = #tpu.dot_dimension_numbers<[1], [0], [0], [1], [0, 0, 1, 1], [], []>} : vector<16x16xf32>, vector<16x16xf32>, vector<16x16xf32> -> vector<16x16xf32>
    %77 = arith.subf %75, %76 : vector<16x16xf32>
    %78 = arith.mulf %71, %74 : vector<16x16xf32>
    %79 = arith.mulf %71, %77 : vector<16x16xf32>
    %cst_56 = arith.constant dense<0.000000e+00> : vector<16x16xf32>
    %80 = tpu.matmul %0, %78, %cst_56 {dimension_numbers = #tpu.dot_dimension_numbers<[1], [0], [0], [1], [0, 0, 1, 1], [], []>} : vector<16x16xf32>, vector<16x16xf32>, vector<16x16xf32> -> vector<16x16xf32>
    %cst_57 = arith.constant dense<0.000000e+00> : vector<16x16xf32>
    %81 = tpu.matmul %1, %79, %cst_57 {dimension_numbers = #tpu.dot_dimension_numbers<[1], [0], [0], [1], [0, 0, 1, 1], [], []>} : vector<16x16xf32>, vector<16x16xf32>, vector<16x16xf32> -> vector<16x16xf32>
    %82 = arith.subf %80, %81 : vector<16x16xf32>
    %c48 = arith.constant 48 : index
    %c0_58 = arith.constant 0 : index
    %83 = vector.load %arg11[%c48, %c0_58] : memref<64x16xf32, #tpu.memory_space<vmem>>, vector<16x16xf32>
    tpu.vector_store %arg11[%c48, %c0_58], %82 {strides = array<i32>} : memref<64x16xf32, #tpu.memory_space<vmem>>, vector<16x16xf32>,
    %cst_59 = arith.constant dense<0.000000e+00> : vector<16x16xf32>
    %84 = tpu.matmul %0, %79, %cst_59 {dimension_numbers = #tpu.dot_dimension_numbers<[1], [0], [0], [1], [0, 0, 1, 1], [], []>} : vector<16x16xf32>, vector<16x16xf32>, vector<16x16xf32> -> vector<16x16xf32>
    %cst_60 = arith.constant dense<0.000000e+00> : vector<16x16xf32>
    %85 = tpu.matmul %1, %78, %cst_60 {dimension_numbers = #tpu.dot_dimension_numbers<[1], [0], [0], [1], [0, 0, 1, 1], [], []>} : vector<16x16xf32>, vector<16x16xf32>, vector<16x16xf32> -> vector<16x16xf32>
    %86 = arith.addf %84, %85 : vector<16x16xf32>
    %c48_61 = arith.constant 48 : index
    %c0_62 = arith.constant 0 : index
    %87 = vector.load %arg12[%c48_61, %c0_62] : memref<64x16xf32, #tpu.memory_space<vmem>>, vector<16x16xf32>
    tpu.vector_store %arg12[%c48_61, %c0_62], %86 {strides = array<i32>} : memref<64x16xf32, #tpu.memory_space<vmem>>, vector<16x16xf32>,
    %c0_63 = arith.constant 0 : index
    %c0_64 = arith.constant 0 : index
    %88 = vector.load %arg11[%c0_63, %c0_64] : memref<64x16xf32, #tpu.memory_space<vmem>>, vector<64x16xf32>
    %cst_65 = arith.constant dense<0.000000e+00> : vector<64x16xf32>
    %89 = tpu.matmul %88, %4, %cst_65 {dimension_numbers = #tpu.dot_dimension_numbers<[1], [0], [0], [1], [0, 0, 1, 1], [], []>} : vector<64x16xf32>, vector<16x16xf32>, vector<64x16xf32> -> vector<64x16xf32>
    %c0_66 = arith.constant 0 : index
    %c0_67 = arith.constant 0 : index
    %90 = vector.load %arg12[%c0_66, %c0_67] : memref<64x16xf32, #tpu.memory_space<vmem>>, vector<64x16xf32>
    %cst_68 = arith.constant dense<0.000000e+00> : vector<64x16xf32>
    %91 = tpu.matmul %90, %5, %cst_68 {dimension_numbers = #tpu.dot_dimension_numbers<[1], [0], [0], [1], [0, 0, 1, 1], [], []>} : vector<64x16xf32>, vector<16x16xf32>, vector<64x16xf32> -> vector<64x16xf32>
    %92 = arith.subf %89, %91 : vector<64x16xf32>
    %c0_69 = arith.constant 0 : index
    %c0_70 = arith.constant 0 : index
    %c0_71 = arith.constant 0 : index
    %93 = vector.load %arg10[%c0_69, %c0_70, %c0_71] : memref<1x64x16xf32, #tpu.memory_space<vmem>>, vector<1x64x16xf32>
    %94 = vector.shape_cast %93 : vector<1x64x16xf32> to vector<64x16xf32>
    %95 = vector.shape_cast %92 : vector<64x16xf32> to vector<1x64x16xf32>
    tpu.vector_store %arg10[%c0_69, %c0_70, %c0_71], %95 {strides = array<i32>} : memref<1x64x16xf32, #tpu.memory_space<vmem>>, vector<1x64x16xf32>,
    return
  }
  func.func @transform_0(%arg0: i32, %arg1: i32) -> (i32, i32, i32) {
    %c0_i32 = arith.constant 0 : i32
    %c0_i32_0 = arith.constant 0 : i32
    return %arg0, %arg1, %c0_i32 : i32, i32, i32
  }
  func.func @transform_1(%arg0: i32, %arg1: i32) -> (i32, i32, i32) {
    %c0_i32 = arith.constant 0 : i32
    %c0_i32_0 = arith.constant 0 : i32
    %c0_i32_1 = arith.constant 0 : i32
    return %c0_i32, %arg1, %c0_i32_0 : i32, i32, i32
  }
  func.func @transform_2(%arg0: i32, %arg1: i32) -> (i32, i32) {
    %c0_i32 = arith.constant 0 : i32
    %c0_i32_0 = arith.constant 0 : i32
    %c0_i32_1 = arith.constant 0 : i32
    return %c0_i32, %c0_i32_0 : i32, i32
  }
  func.func @transform_3(%arg0: i32, %arg1: i32) -> (i32, i32) {
    %c0_i32 = arith.constant 0 : i32
    %c0_i32_0 = arith.constant 0 : i32
    %c0_i32_1 = arith.constant 0 : i32
    return %c0_i32, %c0_i32_0 : i32, i32
  }
  func.func @transform_4(%arg0: i32, %arg1: i32) -> (i32, i32) {
    %c0_i32 = arith.constant 0 : i32
    %c0_i32_0 = arith.constant 0 : i32
    %c0_i32_1 = arith.constant 0 : i32
    return %c0_i32, %c0_i32_0 : i32, i32
  }
  func.func @transform_5(%arg0: i32, %arg1: i32) -> (i32, i32) {
    %c0_i32 = arith.constant 0 : i32
    %c0_i32_0 = arith.constant 0 : i32
    %c0_i32_1 = arith.constant 0 : i32
    return %c0_i32, %c0_i32_0 : i32, i32
  }
  func.func @transform_6(%arg0: i32, %arg1: i32) -> (i32, i32) {
    %c0_i32 = arith.constant 0 : i32
    %c0_i32_0 = arith.constant 0 : i32
    %c0_i32_1 = arith.constant 0 : i32
    return %c0_i32, %c0_i32_0 : i32, i32
  }
  func.func @transform_7(%arg0: i32, %arg1: i32) -> (i32, i32) {
    %c0_i32 = arith.constant 0 : i32
    %c0_i32_0 = arith.constant 0 : i32
    %c0_i32_1 = arith.constant 0 : i32
    return %c0_i32, %c0_i32_0 : i32, i32
  }
  func.func @transform_8(%arg0: i32, %arg1: i32) -> (i32, i32, i32) {
    %c0_i32 = arith.constant 0 : i32
    %c0_i32_0 = arith.constant 0 : i32
    return %arg0, %arg1, %c0_i32 : i32, i32, i32
  }
}

</mosaic_0001>

<bundles_post_ra>
// kernel: tpu_custom_call.1
= control target key start
LH: loop header
LB: loop body
LE: loop exit
PB: predicated region body
PF: predicated region fallthrough
CT: control target
= control target key end

     0   :  { %s1769_s27 = smov 0   ;;  %s1771_s28 = smov 0   ;;  %s2115_s0 = inlined_call_operand.vmem [shape: f32[2,64,16], index: 0, kind: input, shape index: {}]   ;;  %s2116_s1 = inlined_call_operand.vmem [shape: f32[1,64,16], index: 1, kind: input, shape index: {}]   ;;  %s2117_s2 = inlined_call_operand.vmem [shape: f32[16,16], index: 2, kind: input, shape index: {}]   ;;  %s2118_s3 = inlined_call_operand.vmem [shape: f32[16,16], index: 3, kind: input, shape index: {}]   ;;  %s2119_s4 = inlined_call_operand.vmem [shape: f32[16,16], index: 4, kind: input, shape index: {}]   ;;  %s2120_s5 = inlined_call_operand.vmem [shape: f32[16,16], index: 5, kind: input, shape index: {}]   ;;  %s2121_s6 = inlined_call_operand.vmem [shape: f32[16,16], index: 6, kind: input, shape index: {}]   ;;  %s2122_s7 = inlined_call_operand.vmem [shape: f32[16,16], index: 7, kind: input, shape index: {}]   ;;  %s2123_s8 = inlined_call_operand.vmem [shape: f32[2,64,16], index: 8, kind: output, shape index: {}]  }
   0x1   :  { %s1773_s29 = smov 0  }
   0x2 LB: > { %s30_s30 = sadd.s32 1, %s1718_s28  ;;  %p1567_p0 = scmp.ge.s32.totalorder %s1722_s29, 1  ;;  %s1722_s29 = sphi %s1773_s29, %s18_s29   ;;  %s1718_s28 = sphi %s1771_s28, %s2125_s28   ;;  %s1714_s27 = sphi %s1769_s27, %s2124_s27  }
   0x3   : > { %p32_p1 = scmp.ge.s32.totalorder %s30_s30, 2  ;;  %p294_p2 = scmp.lt.s32.totalorder %s1722_s29, 3 }
   0x5   : > { %s2127_s30 = smov (%p32_p1, %s30_s30), 0  ;;  %p295_p3 = pnand %p1567_p0, %p294_p2 }
   0x6   : > { %p342_p4 = scmp.lt.s32.totalorder (!%p295_p3), %s1714_s27, 1 }
   0x7   : > { %298 = sbr.rel (%p295_p3) target bundleno = 1102 (0x44e), region = 52 }
   0xc   : > { %v372_v0 = vld [vmem:[%s2119_s4 + $0x8] sm:$0xff]  ;;  %v371_v2 = vld [vmem:[%s2119_s4] sm:$0xff]  ;;  %s2129_s27 = smov (!%p342_p4, %s1714_s27), 1  ;;  %vm395_vm0 = vcmask 130048   ;;  %v1898_v47 = vld [vmem:[%s2116_s1 + $0x10] sm:$0xff] }
   0xd   : > { %v374_v1 = vld [vmem:[%s2120_s5 + $0x8] sm:$0xff]  ;;  %434 = vmatpush.msra.mxu0 %v372_v0  ;;  %v373_v3 = vld [vmem:[%s2120_s5] sm:$0xff]  ;;  %1672 = vmatpush.msra.mxu2 %v372_v0  ;;  %s1670_s17 = sshll.u32 %s2129_s27, 6  ;;  %v1903_v49 = vld [vmem:[%s2116_s1 + $0x18] sm:$0xff] }
   0xe   : > { %475 = vmatpush.msra.mxu1 %v374_v1  ;;  %1674 = vmatpush.msra.mxu3 %v374_v1  ;;  %s349_s20 = scalar_lea.vmem %s2115_s0, %s1670_s17  ;;  %v1826_v16 = vld [vmem:[%s2118_s3] sm:$0xff]  ;;  %v1842_v20 = vld [vmem:[%s2118_s3 + $0x8] sm:$0xff]  ;;  %s2084_s21 = scalar_lea.vmem %s2123_s8, %s1670_s17 }
   0xf   : > { %435 = vmatpush.msra.mxu0 %v371_v2  ;;  %1673 = vmatpush.msra.mxu2 %v371_v2  ;;  %v379_v4 = vld [vmem:[%s349_s20] sm:$0xff]  ;;  %v380_v6 = vld [vmem:[%s349_s20 + $0x8] sm:$0xff]  ;;  %v381_v8 = vld [vmem:[%s349_s20 + $0x10] sm:$0xff] }
  0x10   : > { %476 = vmatpush.msra.mxu1 %v373_v3  ;;  %1675 = vmatpush.msra.mxu3 %v373_v3  ;;  %v383_v5 = vld [vmem:[%s349_s20 + $0x20] sm:$0xff]  ;;  %v384_v7 = vld [vmem:[%s349_s20 + $0x28] sm:$0xff]  ;;  %v385_v9 = vld [vmem:[%s349_s20 + $0x30] sm:$0xff] }
  0x11   : > { %1572 = vmatmul.msk.f32.vlgmr.msra.gmra.mxu0 %vm395_vm0, %v379_v4  ;;  %1580 = vmatmul.msk.f32.vlgmr.msra.gmra.mxu1 %vm395_vm0, %v379_v4  ;;  %v382_v10 = vld [vmem:[%s349_s20 + $0x18] sm:$0xff]  ;;  %v1831_v17 = vld [vmem:[%s2117_s2] sm:$0xff]  ;;  %v1847_v21 = vld [vmem:[%s2117_s2 + $0x8] sm:$0xff] }
  0x12   : > { %1576 = vmatmul.msk.f32.vlgmr.msra.gmra.mxu2 %vm395_vm0, %v383_v5  ;;  %1584 = vmatmul.msk.f32.vlgmr.msra.gmra.mxu3 %vm395_vm0, %v383_v5  ;;  %v386_v11 = vld [vmem:[%s349_s20 + $0x38] sm:$0xff]  ;;  %v388_v35 = vld [vmem:[%s2116_s1 + $0x8] sm:$0xff]  ;;  %v387_v39 = vld [vmem:[%s2116_s1] sm:$0xff] }
  0x19   : > { %1573 = vmatmul.msk.f32.gmra.mxu0 %vm395_vm0, %v380_v6  ;;  %1581 = vmatmul.msk.f32.gmra.mxu1 %vm395_vm0, %v380_v6 }
  0x1a   : > { %1577 = vmatmul.msk.f32.gmra.mxu2 %vm395_vm0, %v384_v7  ;;  %1585 = vmatmul.msk.f32.gmra.mxu3 %vm395_vm0, %v384_v7 }
  0x21   : > { %1574 = vmatmul.msk.f32.gmra.mxu0 %vm395_vm0, %v381_v8  ;;  %1582 = vmatmul.msk.f32.gmra.mxu1 %vm395_vm0, %v381_v8 }
  0x22   : > { %1578 = vmatmul.msk.f32.gmra.mxu2 %vm395_vm0, %v385_v9  ;;  %1586 = vmatmul.msk.f32.gmra.mxu3 %vm395_vm0, %v385_v9 }
  0x29   : > { %1575 = vmatmul.msk.f32.gmra.mxu0 %vm395_vm0, %v382_v10  ;;  %1583 = vmatmul.msk.f32.gmra.mxu1 %vm395_vm0, %v382_v10 }
  0x2a   : > { %1579 = vmatmul.msk.f32.gmra.mxu2 %vm395_vm0, %v386_v11  ;;  %1587 = vmatmul.msk.f32.gmra.mxu3 %vm395_vm0, %v386_v11 }
  0x8e   : > { %v437_v12 = vpop.f32.mrf.mxu0  ;;  %v478_v13 = vpop.f32.mrf.mxu1 }
  0x95   : > { %v1873_v24 = vpop.f32.mrf.mxu2  ;;  %v1875_v25 = vpop.f32.mrf.mxu3 }
  0x96   : > { %v440_v14 = vpop.f32.mrf.mxu0  ;;  %v481_v15 = vpop.f32.mrf.mxu1 }
  0x97   : > { %522 = vmatpush.msrb.mxu2 %v481_v15  ;;  %551 = vmatpush.msrb.mxu3 %v440_v14 }
  0x99   : > { %523 = vmatpush.msrb.mxu2 %v478_v13  ;;  %552 = vmatpush.msrb.mxu3 %v437_v12 }
  0x9a   : > { %1588 = vmatmul.msk.f32.vlgmr.msrb.gmra.mxu2 %vm395_vm0, %v1826_v16  ;;  %1590 = vmatmul.msk.f32.vlgmr.msrb.gmra.mxu3 %vm395_vm0, %v1831_v17 }
  0x9b   : > { %574 = vmatpush.msra.mxu2 %v481_v15  ;;  %597 = vmatpush.msra.mxu3 %v440_v14 }
  0x9d   : > { %575 = vmatpush.msra.mxu2 %v478_v13  ;;  %598 = vmatpush.msra.mxu3 %v437_v12  ;;  %v1877_v26 = vpop.f32.mrf.mxu2  ;;  %v493_v27 = vpop.f32.mrf.mxu3 }
  0x9e   : > { %v1837_v18 = vpop.f32.mrf.mxu0  ;;  %v484_v19 = vpop.f32.mrf.mxu1 }
  0xa2   : > { %1589 = vmatmul.msk.f32.gmra.mxu2 %vm395_vm0, %v1842_v20  ;;  %1591 = vmatmul.msk.f32.gmra.mxu3 %vm395_vm0, %v1847_v21 }
  0xa5   : > { %v1879_v28 = vpop.f32.mrf.mxu2  ;;  %v1881_v29 = vpop.f32.mrf.mxu3 }
  0xa6   : > { %v1853_v22 = vpop.f32.mrf.mxu0  ;;  %v487_v23 = vpop.f32.mrf.mxu1 }
  0xa7   : > { %724 = vmatpush.msrb.mxu0 %v487_v23  ;;  %747 = vmatpush.msrb.mxu1 %v1853_v22 }
  0xa9   : > { %725 = vmatpush.msrb.mxu0 %v484_v19  ;;  %748 = vmatpush.msrb.mxu1 %v1837_v18 }
  0xaa   : > { %1592 = vmatmul.msk.f32.vlgmr.msra.gmra.mxu2 %vm395_vm0, %v1831_v17  ;;  %1594 = vmatmul.msk.f32.vlgmr.msra.gmra.mxu3 %vm395_vm0, %v1826_v16 }
  0xab   : > { %1604 = vmatmul.msk.f32.vlgmr.msrb.gmra.mxu0 %vm395_vm0, %v1826_v16  ;;  %1606 = vmatmul.msk.f32.vlgmr.msrb.gmra.mxu1 %vm395_vm0, %v1831_v17 }
  0xad   : > { %v1883_v30 = vpop.f32.mrf.mxu2  ;;  %v1885_v31 = vpop.f32.mrf.mxu3 }
  0xb2   : > { %1593 = vmatmul.msk.f32.gmra.mxu2 %vm395_vm0, %v1847_v21  ;;  %1595 = vmatmul.msk.f32.gmra.mxu3 %vm395_vm0, %v1842_v20 }
  0xb3   : > { %1605 = vmatmul.msk.f32.gmra.mxu0 %vm395_vm0, %v1842_v20  ;;  %1607 = vmatmul.msk.f32.gmra.mxu1 %vm395_vm0, %v1847_v21 }
 0x11d   : > { %v525_v32 = vpop.f32.mrf.mxu2  ;;  %v554_v33 = vpop.f32.mrf.mxu3 }
 0x11e   : > { %v555_v37 = vadd.f32 %v554_v33, %v525_v32 }
 0x120   : > { %v608_v43 = vmul.f32 %v555_v37, %v387_v39 }
 0x125   : > { %v528_v34 = vpop.f32.mrf.mxu2  ;;  %v557_v36 = vpop.f32.mrf.mxu3 }
 0x126   : > { %v558_v38 = vadd.f32 %v557_v36, %v528_v34 }
 0x128   : > { %v609_v40 = vmul.f32 %v558_v38, %v388_v35  ;;  %v727_v41 = vpop.f32.mrf.mxu0  ;;  %v750_v42 = vpop.f32.mrf.mxu1 }
 0x129   : > { %v751_v46 = vadd.f32 %v750_v42, %v727_v41  ;;  %v392_v41 = vld [vmem:[%s2116_s1 + $0x28] sm:$0xff] }
 0x12a   : > { %626 = vmatpush.msrb.mxu2 %v609_v40 }
 0x12b   : > { %v804_v52 = vmul.f32 %v751_v46, %v1898_v47 }
 0x12c   : > { %627 = vmatpush.msrb.mxu2 %v608_v43 }
 0x12d   : > { %v577_v44 = vpop.f32.mrf.mxu2  ;;  %v600_v45 = vpop.f32.mrf.mxu3  ;;  %1596 = vmatmul.msk.f32.vlgmr.msrb.gmra.mxu2 %vm395_vm0, %v1831_v17 }
 0x12e   : > { %676 = vmatpush.msra.mxu2 %v609_v40  ;;  %v606_v56 = vsub.f32 %v577_v44, %v600_v45  ;;  %v391_v45 = vld [vmem:[%s2116_s1 + $0x20] sm:$0xff] }
 0x130   : > { %v730_v48 = vpop.f32.mrf.mxu0  ;;  %v753_v50 = vpop.f32.mrf.mxu1  ;;  %677 = vmatpush.msra.mxu2 %v608_v43  ;;  %v610_v59 = vmul.f32 %v606_v56, %v387_v39 }
 0x131   : > { %v754_v51 = vadd.f32 %v753_v50, %v730_v48 }
 0x132   : > { %770 = vmatpush.msrb.mxu2 %v487_v23 }
 0x133   : > { %v805_v53 = vmul.f32 %v754_v51, %v1903_v49 }
 0x134   : > { %771 = vmatpush.msrb.mxu2 %v484_v19 }
 0x135   : > { %822 = vmatpush.msra.mxu0 %v805_v53  ;;  %v580_v54 = vpop.f32.mrf.mxu2  ;;  %v603_v55 = vpop.f32.mrf.mxu3  ;;  %1597 = vmatmul.msk.f32.gmra.mxu2 %vm395_vm0, %v1847_v21 }
 0x136   : > { %v607_v57 = vsub.f32 %v580_v54, %v603_v55 }
 0x137   : > { %823 = vmatpush.msra.mxu0 %v804_v52 }
 0x138   : > { %v611_v58 = vmul.f32 %v607_v57, %v388_v35  ;;  %1612 = vmatmul.msk.f32.vlgmr.msra.gmra.mxu0 %vm395_vm0, %v1831_v17 }
 0x139   : > { %920 = vmatpush.msrb.mxu0 %v493_v27 }
 0x13a   : > { %649 = vmatpush.msrb.mxu3 %v611_v58 }
 0x13b   : > { %921 = vmatpush.msrb.mxu0 %v1875_v25 }
 0x13c   : > { %650 = vmatpush.msrb.mxu3 %v610_v59 }
 0x13d   : > { %1598 = vmatmul.msk.f32.vlgmr.msrb.gmra.mxu3 %vm395_vm0, %v1826_v16  ;;  %1600 = vmatmul.msk.f32.vlgmr.msra.gmra.mxu2 %vm395_vm0, %v1826_v16 }
 0x13e   : > { %699 = vmatpush.msra.mxu3 %v611_v58  ;;  %872 = vmatpush.msra.mxu2 %v805_v53 }
 0x140   : > { %700 = vmatpush.msra.mxu3 %v610_v59  ;;  %873 = vmatpush.msra.mxu2 %v804_v52 }
 0x141   : > { %1613 = vmatmul.msk.f32.gmra.mxu0 %vm395_vm0, %v1847_v21 }
 0x142   : > { %793 = vmatpush.msrb.mxu3 %v1853_v22 }
 0x144   : > { %794 = vmatpush.msrb.mxu3 %v1837_v18 }
 0x145   : > { %1599 = vmatmul.msk.f32.gmra.mxu3 %vm395_vm0, %v1842_v20  ;;  %1601 = vmatmul.msk.f32.gmra.mxu2 %vm395_vm0, %v1842_v20 }
 0x149   : > { %1620 = vmatmul.msk.f32.vlgmr.msrb.gmra.mxu0 %vm395_vm0, %v1826_v16 }
 0x14d   : > { %1602 = vmatmul.msk.f32.vlgmr.msra.gmra.mxu3 %vm395_vm0, %v1831_v17  ;;  %1608 = vmatmul.msk.f32.vlgmr.msrb.gmra.mxu2 %vm395_vm0, %v1831_v17 }
 0x14e   : > { %966 = vmatpush.msrb.mxu2 %v493_v27 }
 0x150   : > { %967 = vmatpush.msrb.mxu2 %v1875_v25 }
 0x151   : > { %1621 = vmatmul.msk.f32.gmra.mxu0 %vm395_vm0, %v1842_v20 }
 0x155   : > { %1603 = vmatmul.msk.f32.gmra.mxu3 %vm395_vm0, %v1847_v21  ;;  %1609 = vmatmul.msk.f32.gmra.mxu2 %vm395_vm0, %v1847_v21 }
 0x15d   : > { %1610 = vmatmul.msk.f32.vlgmr.msrb.gmra.mxu3 %vm395_vm0, %v1826_v16  ;;  %1616 = vmatmul.msk.f32.vlgmr.msra.gmra.mxu2 %vm395_vm0, %v1826_v16 }
 0x165   : > { %1611 = vmatmul.msk.f32.gmra.mxu3 %vm395_vm0, %v1842_v20  ;;  %1617 = vmatmul.msk.f32.gmra.mxu2 %vm395_vm0, %v1842_v20 }
 0x16d   : > { %1624 = vmatmul.msk.f32.vlgmr.msrb.gmra.mxu2 %vm395_vm0, %v1831_v17 }
 0x175   : > { %1625 = vmatmul.msk.f32.gmra.mxu2 %vm395_vm0, %v1847_v21 }
 0x1b0   : > { %v629_v60 = vpop.f32.mrf.mxu2 }
 0x1b5   : > { %v825_v18 = vpop.f32.mrf.mxu0 }
 0x1b8   : > { %v632_v61 = vpop.f32.mrf.mxu2 }
 0x1c0   : > { %v652_v62 = vpop.f32.mrf.mxu3  ;;  %v679_v1 = vpop.f32.mrf.mxu2 }
 0x1c1   : > { %v658_v63 = vsub.f32 %v629_v60, %v652_v62 }
 0x1c3   : > { %660 = vst.msk [vmem:[#allocation2] sm:$0xff] %vm395_vm0, %v658_v63 }
 0x1c8   : > { %v655_v0 = vpop.f32.mrf.mxu3  ;;  %v682_v5 = vpop.f32.mrf.mxu2 }
 0x1c9   : > { %v659_v2 = vsub.f32 %v632_v61, %v655_v0 }
 0x1cb   : > { %661 = vst.msk [vmem:[#allocation2 + $0x8] sm:$0xff] %vm395_vm0, %v659_v2 }
 0x1d0   : > { %v702_v3 = vpop.f32.mrf.mxu3  ;;  %v773_v8 = vpop.f32.mrf.mxu2 }
 0x1d1   : > { %v703_v4 = vadd.f32 %v702_v3, %v679_v1  ;;  %v394_v3 = vld [vmem:[%s2116_s1 + $0x38] sm:$0xff] }
 0x1d3   : > { %708 = vst.msk [vmem:[#allocation3] sm:$0xff] %vm395_vm0, %v703_v4 }
 0x1d8   : > { %v705_v6 = vpop.f32.mrf.mxu3  ;;  %v776_v10 = vpop.f32.mrf.mxu2 }
 0x1d9   : > { %v706_v7 = vadd.f32 %v705_v6, %v682_v5 }
 0x1db   : > { %709 = vst.msk [vmem:[#allocation3 + $0x8] sm:$0xff] %vm395_vm0, %v706_v7  ;;  %v393_v7 = vld [vmem:[%s2116_s1 + $0x30] sm:$0xff] }
 0x1e0   : > { %v796_v9 = vpop.f32.mrf.mxu3  ;;  %v875_v19 = vpop.f32.mrf.mxu2 }
 0x1e1   : > { %v802_v12 = vsub.f32 %v773_v8, %v796_v9 }
 0x1e3   : > { %v806_v15 = vmul.f32 %v802_v12, %v1898_v47  ;;  %v376_v12 = vld [vmem:[%s2121_s6 + $0x8] sm:$0xff] }
 0x1e8   : > { %v799_v11 = vpop.f32.mrf.mxu3  ;;  %v878_v32 = vpop.f32.mrf.mxu2 }
 0x1e9   : > { %v803_v13 = vsub.f32 %v776_v10, %v799_v11 }
 0x1eb   : > { %v807_v14 = vmul.f32 %v803_v13, %v1903_v49 }
 0x1ed   : > { %845 = vmatpush.msra.mxu1 %v807_v14  ;;  %895 = vmatpush.msra.mxu3 %v807_v14 }
 0x1ef   : > { %846 = vmatpush.msra.mxu1 %v806_v15  ;;  %896 = vmatpush.msra.mxu3 %v806_v15 }
 0x1f0   : > { %1614 = vmatmul.msk.f32.vlgmr.msra.gmra.mxu1 %vm395_vm0, %v1826_v16  ;;  %1618 = vmatmul.msk.f32.vlgmr.msra.gmra.mxu3 %vm395_vm0, %v1831_v17  ;;  %v969_v38 = vpop.f32.mrf.mxu2 }
 0x1f1   : > { %943 = vmatpush.msrb.mxu1 %v1877_v26  ;;  %989 = vmatpush.msrb.mxu3 %v1877_v26 }
 0x1f3   : > { %944 = vmatpush.msrb.mxu1 %v1873_v24  ;;  %990 = vmatpush.msrb.mxu3 %v1873_v24  ;;  %v828_v24 = vpop.f32.mrf.mxu0 }
 0x1f8   : > { %1615 = vmatmul.msk.f32.gmra.mxu1 %vm395_vm0, %v1842_v20  ;;  %1619 = vmatmul.msk.f32.gmra.mxu3 %vm395_vm0, %v1847_v21  ;;  %v972_v47 = vpop.f32.mrf.mxu2 }
 0x1fb   : > { %v923_v34 = vpop.f32.mrf.mxu0 }
 0x200   : > { %1622 = vmatmul.msk.f32.vlgmr.msrb.gmra.mxu1 %vm395_vm0, %v1831_v17  ;;  %1626 = vmatmul.msk.f32.vlgmr.msrb.gmra.mxu3 %vm395_vm0, %v1826_v16 }
 0x203   : > { %v926_v40 = vpop.f32.mrf.mxu0 }
 0x208   : > { %1623 = vmatmul.msk.f32.gmra.mxu1 %vm395_vm0, %v1847_v21  ;;  %1627 = vmatmul.msk.f32.gmra.mxu3 %vm395_vm0, %v1842_v20 }
 0x26d   : > { %v848_v22 = vpop.f32.mrf.mxu1 }
 0x26e   : > { %v854_v23 = vsub.f32 %v825_v18, %v848_v22  ;;  %v375_v18 = vld [vmem:[%s2121_s6] sm:$0xff]  ;;  %v378_v22 = vld [vmem:[%s2122_s7 + $0x8] sm:$0xff] }
 0x270   : > { %856 = vst.msk [vmem:[#allocation2 + $0x10] sm:$0xff] %vm395_vm0, %v854_v23  ;;  %v377_v23 = vld [vmem:[%s2122_s7] sm:$0xff] }
 0x273   : > { %v898_v25 = vpop.f32.mrf.mxu3 }
 0x274   : > { %v899_v26 = vadd.f32 %v898_v25, %v875_v19  ;;  %v1372_v25 = vld [vmem:[#allocation3 + $0x8] sm:$0xff] }
 0x275   : > { %v851_v27 = vpop.f32.mrf.mxu1 }
 0x276   : > { %904 = vst.msk [vmem:[#allocation3 + $0x10] sm:$0xff] %vm395_vm0, %v899_v26  ;;  %v855_v33 = vsub.f32 %v828_v24, %v851_v27  ;;  %v1371_v24 = vld [vmem:[#allocation3] sm:$0xff] }
 0x277   : > { %v1300_v26 = vld [vmem:[#allocation2 + $0x10] sm:$0xff] }
 0x278   : > { %857 = vst.msk [vmem:[#allocation2 + $0x18] sm:$0xff] %vm395_vm0, %v855_v33 }
 0x27b   : > { %v901_v35 = vpop.f32.mrf.mxu3 }
 0x27c   : > { %v902_v36 = vadd.f32 %v901_v35, %v878_v32 }
 0x27d   : > { %v946_v37 = vpop.f32.mrf.mxu1  ;;  %v1373_v27 = vld [vmem:[#allocation3 + $0x10] sm:$0xff] }
 0x27e   : > { %905 = vst.msk [vmem:[#allocation3 + $0x18] sm:$0xff] %vm395_vm0, %v902_v36  ;;  %v947_v43 = vadd.f32 %v946_v37, %v923_v34 }
 0x280   : > { %v1000_v48 = vmul.f32 %v947_v43, %v391_v45 }
 0x283   : > { %v992_v39 = vpop.f32.mrf.mxu3 }
 0x284   : > { %v998_v50 = vsub.f32 %v969_v38, %v992_v39 }
 0x285   : > { %v949_v42 = vpop.f32.mrf.mxu1 }
 0x286   : > { %v950_v44 = vadd.f32 %v949_v42, %v926_v40  ;;  %v1002_v53 = vmul.f32 %v998_v50, %v391_v45 }
 0x288   : > { %v1001_v46 = vmul.f32 %v950_v44, %v392_v41 }
 0x28a   : > { %1018 = vmatpush.msra.mxu0 %v1001_v46  ;;  %1068 = vmatpush.msra.mxu2 %v1001_v46 }
 0x28b   : > { %v995_v49 = vpop.f32.mrf.mxu3 }
 0x28c   : > { %v999_v51 = vsub.f32 %v972_v47, %v995_v49  ;;  %1019 = vmatpush.msra.mxu0 %v1000_v48  ;;  %1069 = vmatpush.msra.mxu2 %v1000_v48 }
 0x28d   : > { %1628 = vmatmul.msk.f32.vlgmr.msra.gmra.mxu0 %vm395_vm0, %v1831_v17  ;;  %1632 = vmatmul.msk.f32.vlgmr.msra.gmra.mxu2 %vm395_vm0, %v1826_v16 }
 0x28e   : > { %1116 = vmatpush.msrb.mxu0 %v1885_v31  ;;  %1162 = vmatpush.msrb.mxu2 %v1885_v31  ;;  %v1003_v52 = vmul.f32 %v999_v51, %v392_v41 }
 0x290   : > { %1117 = vmatpush.msrb.mxu0 %v1881_v29  ;;  %1163 = vmatpush.msrb.mxu2 %v1881_v29 }
 0x291   : > { %1041 = vmatpush.msra.mxu1 %v1003_v52  ;;  %1091 = vmatpush.msra.mxu3 %v1003_v52 }
 0x293   : > { %1042 = vmatpush.msra.mxu1 %v1002_v53  ;;  %1092 = vmatpush.msra.mxu3 %v1002_v53 }
 0x294   : > { %1630 = vmatmul.msk.f32.vlgmr.msra.gmra.mxu1 %vm395_vm0, %v1826_v16  ;;  %1634 = vmatmul.msk.f32.vlgmr.msra.gmra.mxu3 %vm395_vm0, %v1831_v17 }
 0x295   : > { %1139 = vmatpush.msrb.mxu1 %v1883_v30  ;;  %1185 = vmatpush.msrb.mxu3 %v1883_v30 }
 0x296   : > { %1629 = vmatmul.msk.f32.gmra.mxu0 %vm395_vm0, %v1847_v21  ;;  %1633 = vmatmul.msk.f32.gmra.mxu2 %vm395_vm0, %v1842_v20 }
 0x297   : > { %1140 = vmatpush.msrb.mxu1 %v1879_v28  ;;  %1186 = vmatpush.msrb.mxu3 %v1879_v28 }
 0x29c   : > { %1631 = vmatmul.msk.f32.gmra.mxu1 %vm395_vm0, %v1842_v20  ;;  %1635 = vmatmul.msk.f32.gmra.mxu3 %vm395_vm0, %v1847_v21 }
 0x29e   : > { %1636 = vmatmul.msk.f32.vlgmr.msrb.gmra.mxu0 %vm395_vm0, %v1826_v16  ;;  %1640 = vmatmul.msk.f32.vlgmr.msrb.gmra.mxu2 %vm395_vm0, %v1831_v17 }
 0x2a4   : > { %1638 = vmatmul.msk.f32.vlgmr.msrb.gmra.mxu1 %vm395_vm0, %v1831_v17  ;;  %1642 = vmatmul.msk.f32.vlgmr.msrb.gmra.mxu3 %vm395_vm0, %v1826_v16 }
 0x2a6   : > { %1637 = vmatmul.msk.f32.gmra.mxu0 %vm395_vm0, %v1842_v20  ;;  %1641 = vmatmul.msk.f32.gmra.mxu2 %vm395_vm0, %v1847_v21 }
 0x2ac   : > { %1639 = vmatmul.msk.f32.gmra.mxu1 %vm395_vm0, %v1847_v21  ;;  %1643 = vmatmul.msk.f32.gmra.mxu3 %vm395_vm0, %v1842_v20 }
 0x30a   : > { %v1021_v28 = vpop.f32.mrf.mxu0 }
 0x310   : > { %v1071_v31 = vpop.f32.mrf.mxu2 }
 0x311   : > { %v1044_v29 = vpop.f32.mrf.mxu1 }
 0x312   : > { %v1050_v30 = vsub.f32 %v1021_v28, %v1044_v29 }
 0x313   : > { %v1024_v54 = vpop.f32.mrf.mxu0 }
 0x314   : > { %1052 = vst.msk [vmem:[#allocation2 + $0x20] sm:$0xff] %vm395_vm0, %v1050_v30 }
 0x317   : > { %v1094_v55 = vpop.f32.mrf.mxu3 }
 0x318   : > { %v1095_v56 = vadd.f32 %v1094_v55, %v1071_v31 }
 0x319   : > { %v1047_v57 = vpop.f32.mrf.mxu1  ;;  %v1074_v59 = vpop.f32.mrf.mxu2 }
 0x31a   : > { %1100 = vst.msk [vmem:[#allocation3 + $0x20] sm:$0xff] %vm395_vm0, %v1095_v56  ;;  %v1051_v58 = vsub.f32 %v1024_v54, %v1047_v57 }
 0x31b   : > { %v1119_v60 = vpop.f32.mrf.mxu0  ;;  %v1302_v32 = vld [vmem:[#allocation2 + $0x20] sm:$0xff] }
 0x31c   : > { %1053 = vst.msk [vmem:[#allocation2 + $0x28] sm:$0xff] %vm395_vm0, %v1051_v58 }
 0x31f   : > { %v1097_v61 = vpop.f32.mrf.mxu3 }
 0x320   : > { %v1098_v62 = vadd.f32 %v1097_v61, %v1074_v59 }
 0x321   : > { %v1142_v63 = vpop.f32.mrf.mxu1  ;;  %v1165_v0 = vpop.f32.mrf.mxu2  ;;  %v1375_v33 = vld [vmem:[#allocation3 + $0x20] sm:$0xff] }
 0x322   : > { %1101 = vst.msk [vmem:[#allocation3 + $0x28] sm:$0xff] %vm395_vm0, %v1098_v62  ;;  %v1143_v5 = vadd.f32 %v1142_v63, %v1119_v60 }
 0x323   : > { %v1122_v2 = vpop.f32.mrf.mxu0  ;;  %v1303_v34 = vld [vmem:[#allocation2 + $0x28] sm:$0xff] }
 0x324   : > { %v1196_v10 = vmul.f32 %v1143_v5, %v393_v7 }
 0x327   : > { %v1188_v1 = vpop.f32.mrf.mxu3 }
 0x328   : > { %v1194_v13 = vsub.f32 %v1165_v0, %v1188_v1 }
 0x329   : > { %v1145_v4 = vpop.f32.mrf.mxu1  ;;  %v1168_v9 = vpop.f32.mrf.mxu2  ;;  %v1376_v35 = vld [vmem:[#allocation3 + $0x28] sm:$0xff] }
 0x32a   : > { %v1146_v6 = vadd.f32 %v1145_v4, %v1122_v2  ;;  %v1198_v19 = vmul.f32 %v1194_v13, %v393_v7 }
 0x32c   : > { %v1197_v8 = vmul.f32 %v1146_v6, %v394_v3 }
 0x32e   : > { %1214 = vmatpush.msra.mxu0 %v1197_v8  ;;  %1264 = vmatpush.msra.mxu2 %v1197_v8 }
 0x32f   : > { %v1191_v11 = vpop.f32.mrf.mxu3 }
 0x330   : > { %v1195_v14 = vsub.f32 %v1168_v9, %v1191_v11  ;;  %1215 = vmatpush.msra.mxu0 %v1196_v10  ;;  %1265 = vmatpush.msra.mxu2 %v1196_v10 }
 0x331   : > { %1644 = vmatmul.msk.f32.vlgmr.msra.gmra.mxu0 %vm395_vm0, %v1831_v17  ;;  %1648 = vmatmul.msk.f32.vlgmr.msra.gmra.mxu2 %vm395_vm0, %v1826_v16 }
 0x332   : > { %v1199_v15 = vmul.f32 %v1195_v14, %v394_v3  ;;  %1344 = vmatpush.msrb.mxu0 %v376_v12 }
 0x334   : > { %1237 = vmatpush.msra.mxu1 %v1199_v15  ;;  %1287 = vmatpush.msra.mxu3 %v1199_v15 }
 0x335   : > { %1345 = vmatpush.msrb.mxu0 %v375_v18 }
 0x336   : > { %1238 = vmatpush.msra.mxu1 %v1198_v19  ;;  %1288 = vmatpush.msra.mxu3 %v1198_v19 }
 0x337   : > { %1646 = vmatmul.msk.f32.vlgmr.msra.gmra.mxu1 %vm395_vm0, %v1826_v16  ;;  %1650 = vmatmul.msk.f32.vlgmr.msra.gmra.mxu3 %vm395_vm0, %v1831_v17  ;;  %v1298_v16 = vld [vmem:[#allocation2] sm:$0xff]  ;;  %v1299_v17 = vld [vmem:[#allocation2 + $0x8] sm:$0xff] }
 0x338   : > { %1417 = vmatpush.msrb.mxu1 %v378_v22 }
 0x339   : > { %1645 = vmatmul.msk.f32.gmra.mxu0 %vm395_vm0, %v1847_v21  ;;  %1649 = vmatmul.msk.f32.gmra.mxu2 %vm395_vm0, %v1842_v20 }
 0x33a   : > { %1418 = vmatpush.msrb.mxu1 %v377_v23 }
 0x33f   : > { %1647 = vmatmul.msk.f32.gmra.mxu1 %vm395_vm0, %v1842_v20  ;;  %1651 = vmatmul.msk.f32.gmra.mxu3 %vm395_vm0, %v1847_v21  ;;  %v1301_v20 = vld [vmem:[#allocation2 + $0x18] sm:$0xff] }
 0x340   : > { %v1374_v21 = vld [vmem:[#allocation3 + $0x18] sm:$0xff] }
 0x341   : > { %1652 = vmatmul.msk.f32.vlgmr.msrb.gmra.mxu0 %vm395_vm0, %v1298_v16 }
 0x347   : > { %1660 = vmatmul.msk.f32.vlgmr.msrb.gmra.mxu1 %vm395_vm0, %v1371_v24 }
 0x349   : > { %1653 = vmatmul.msk.f32.gmra.mxu0 %vm395_vm0, %v1299_v17 }
 0x34f   : > { %1661 = vmatmul.msk.f32.gmra.mxu1 %vm395_vm0, %v1372_v25 }
 0x351   : > { %1654 = vmatmul.msk.f32.gmra.mxu0 %vm395_vm0, %v1300_v26 }
 0x357   : > { %1662 = vmatmul.msk.f32.gmra.mxu1 %vm395_vm0, %v1373_v27 }
 0x359   : > { %1655 = vmatmul.msk.f32.gmra.mxu0 %vm395_vm0, %v1301_v20 }
 0x35f   : > { %1663 = vmatmul.msk.f32.gmra.mxu1 %vm395_vm0, %v1374_v21 }
 0x361   : > { %1656 = vmatmul.msk.f32.gmra.mxu0 %vm395_vm0, %v1302_v32 }
 0x367   : > { %1664 = vmatmul.msk.f32.gmra.mxu1 %vm395_vm0, %v1375_v33 }
 0x369   : > { %1657 = vmatmul.msk.f32.gmra.mxu0 %vm395_vm0, %v1303_v34 }
 0x36f   : > { %1665 = vmatmul.msk.f32.gmra.mxu1 %vm395_vm0, %v1376_v35 }
 0x3ae   : > { %v1217_v36 = vpop.f32.mrf.mxu0 }
 0x3b4   : > { %v1240_v37 = vpop.f32.mrf.mxu1  ;;  %v1267_v40 = vpop.f32.mrf.mxu2 }
 0x3b5   : > { %v1246_v38 = vsub.f32 %v1217_v36, %v1240_v37 }
 0x3b6   : > { %v1220_v39 = vpop.f32.mrf.mxu0 }
 0x3b7   : > { %1248 = vst.msk [vmem:[#allocation2 + $0x30] sm:$0xff] %vm395_vm0, %v1246_v38 }
 0x3ba   : > { %v1290_v41 = vpop.f32.mrf.mxu3 }
 0x3bb   : > { %v1291_v42 = vadd.f32 %v1290_v41, %v1267_v40 }
 0x3bc   : > { %v1243_v43 = vpop.f32.mrf.mxu1  ;;  %v1270_v47 = vpop.f32.mrf.mxu2 }
 0x3bd   : > { %v1247_v44 = vsub.f32 %v1220_v39, %v1243_v43  ;;  %1296 = vst.msk [vmem:[#allocation3 + $0x30] sm:$0xff] %vm395_vm0, %v1291_v42 }
 0x3be   : > { %v1347_v45 = vpop.f32.mrf.mxu0  ;;  %v1304_v46 = vld [vmem:[#allocation2 + $0x30] sm:$0xff] }
 0x3bf   : > { %1249 = vst.msk [vmem:[#allocation2 + $0x38] sm:$0xff] %vm395_vm0, %v1247_v44  ;;  %1658 = vmatmul.msk.f32.gmra.mxu0 %vm395_vm0, %v1304_v46 }
 0x3c2   : > { %v1293_v48 = vpop.f32.mrf.mxu3 }
 0x3c3   : > { %v1294_v49 = vadd.f32 %v1293_v48, %v1270_v47 }
 0x3c4   : > { %v1420_v50 = vpop.f32.mrf.mxu1  ;;  %v1377_v51 = vld [vmem:[#allocation3 + $0x30] sm:$0xff] }
 0x3c5   : > { %v1444_v52 = vsub.f32 %v1347_v45, %v1420_v50  ;;  %1297 = vst.msk [vmem:[#allocation3 + $0x38] sm:$0xff] %vm395_vm0, %v1294_v49  ;;  %1666 = vmatmul.msk.f32.gmra.mxu1 %vm395_vm0, %v1377_v51 }
 0x3c6   : > { %v1350_v53 = vpop.f32.mrf.mxu0  ;;  %v1305_v28 = vld [vmem:[#allocation2 + $0x38] sm:$0xff] }
 0x3c7   : > { %1452 = vst.msk [vmem:[%s2084_s21] sm:$0xff] %vm395_vm0, %v1444_v52  ;;  %1659 = vmatmul.msk.f32.gmra.mxu0 %vm395_vm0, %v1305_v28 }
 0x3cc   : > { %v1423_v29 = vpop.f32.mrf.mxu1  ;;  %v1378_v30 = vld [vmem:[#allocation3 + $0x38] sm:$0xff] }
 0x3cd   : > { %v1445_v31 = vsub.f32 %v1350_v53, %v1423_v29  ;;  %1667 = vmatmul.msk.f32.gmra.mxu1 %vm395_vm0, %v1378_v30 }
 0x3ce   : > { %v1353_v54 = vpop.f32.mrf.mxu0 }
 0x3cf   : > { %1453 = vst.msk [vmem:[%s2084_s21 + $0x8] sm:$0xff] %vm395_vm0, %v1445_v31 }
 0x3d4   : > { %v1426_v55 = vpop.f32.mrf.mxu1 }
 0x3d5   : > { %v1446_v56 = vsub.f32 %v1353_v54, %v1426_v55 }
 0x3d6   : > { %v1356_v57 = vpop.f32.mrf.mxu0 }
 0x3d7   : > { %1454 = vst.msk [vmem:[%s2084_s21 + $0x10] sm:$0xff] %vm395_vm0, %v1446_v56 }
 0x3dc   : > { %v1429_v58 = vpop.f32.mrf.mxu1 }
 0x3dd   : > { %v1447_v59 = vsub.f32 %v1356_v57, %v1429_v58 }
 0x3de   : > { %v1359_v60 = vpop.f32.mrf.mxu0 }
 0x3df   : > { %1455 = vst.msk [vmem:[%s2084_s21 + $0x18] sm:$0xff] %vm395_vm0, %v1447_v59 }
 0x3e4   : > { %v1432_v61 = vpop.f32.mrf.mxu1 }
 0x3e5   : > { %v1448_v62 = vsub.f32 %v1359_v60, %v1432_v61 }
 0x3e6   : > { %v1362_v63 = vpop.f32.mrf.mxu0 }
 0x3e7   : > { %1456 = vst.msk [vmem:[%s2084_s21 + $0x20] sm:$0xff] %vm395_vm0, %v1448_v62 }
 0x3ec   : > { %v1435_v0 = vpop.f32.mrf.mxu1 }
 0x3ed   : > { %v1449_v1 = vsub.f32 %v1362_v63, %v1435_v0 }
 0x3ef   : > { %1457 = vst.msk [vmem:[%s2084_s21 + $0x28] sm:$0xff] %vm395_vm0, %v1449_v1 }
 0x43c   : > { %v1365_v2 = vpop.f32.mrf.mxu0 }
 0x442   : > { %v1438_v3 = vpop.f32.mrf.mxu1 }
 0x443   : > { %v1450_v4 = vsub.f32 %v1365_v2, %v1438_v3 }
 0x444   : > { %v1368_v5 = vpop.f32.mrf.mxu0 }
 0x445   : > { %1458 = vst.msk [vmem:[%s2084_s21 + $0x30] sm:$0xff] %vm395_vm0, %v1450_v4 }
 0x44a   : > { %v1441_v6 = vpop.f32.mrf.mxu1 }
 0x44b   : > { %v1451_v7 = vsub.f32 %v1368_v5, %v1441_v6 }
 0x44d   : > { %1459 = vst.msk [vmem:[%s2084_s21 + $0x38] sm:$0xff] %vm395_vm0, %v1451_v7 }
 0x44e PF: > { %s18_s29 = sadd.s32 1, %s1722_s29   ;;  %s2124_s27 = smov %s1718_s28 }
 0x44f   : > { %p15_p5 = scmp.ge.s32.totalorder %s18_s29, 4   ;;  %s2125_s28 = smov %s2127_s30 }
 0x451   :  { %17 = sbr.rel (!%p15_p5) target bundleno = 2 (0x2), region = 85 }

</bundles_post_ra>
